<compile_context>
chip_gen: v6e
topology: v6e:2x2x1
jax: 0.10.0
libtpu: 0.0.40
codegen_flags: <defaults>
</compile_context>

<pallas_src>
import jax
import jax.numpy as jnp
import numpy as np
from jax import lax
from jax.experimental import pallas as pl
from jax.experimental.pallas import tpu as pltpu


# ----------------------------------------------------------------------------
# Host-side helpers
# ----------------------------------------------------------------------------

def _interp_matrix(out_size: int, in_size: int, scale: float = 1.0) -> np.ndarray:
    """(out_size, in_size) matrix for 1-D linear interpolation with
    align_corners=True (PyTorch convention), with an optional scalar folded in."""
    if out_size == 1:
        coords = np.zeros((1,), dtype=np.float64)
    else:
        coords = np.arange(out_size, dtype=np.float64) * (in_size - 1) / (out_size - 1)
    i0 = np.clip(np.floor(coords).astype(np.int64), 0, in_size - 1)
    i1 = np.minimum(i0 + 1, in_size - 1)
    w1 = coords - i0
    w0 = 1.0 - w1
    A = np.zeros((out_size, in_size), dtype=np.float64)
    A[np.arange(out_size), i0] += w0
    A[np.arange(out_size), i1] += w1
    return (A * scale).astype(np.float32)


def _round_up(x: int, m: int) -> int:
    return ((x + m - 1) // m) * m


def _tile_bytes(shape, dtype_bytes: int) -> int:
    """VMEM footprint of a block after (sublane, lane) tile padding:
    last dim pads to 128 lanes, second-to-last pads to 8 sublanes for 4-byte
    dtypes (16 for 2-byte, 32 for 1-byte)."""
    if len(shape) == 1:
        return _round_up(shape[0] * dtype_bytes, 512)
    *lead, s, l = shape
    sub = 8 * (4 // dtype_bytes) if dtype_bytes in (1, 2, 4) else 8
    n_lead = 1
    for d in lead:
        n_lead *= int(d)
    return n_lead * _round_up(s, sub) * _round_up(l, 128) * dtype_bytes


def _step_vmem_bytes(b, h, w, h_out, w_out, in_bytes, out_bytes, cmp_bytes) -> int:
    """Padding-aware VMEM need of one grid step (double-buffered blocks +
    constants + scratch + live in-kernel intermediates)."""
    in_blk = _tile_bytes((b, h, w), in_bytes)
    out_blk = _tile_bytes((b, h_out, w_out), out_bytes)
    consts = _tile_bytes((h_out, h), cmp_bytes) + _tile_bytes((w, w_out), cmp_bytes)
    y_scr = _tile_bytes((b, h, w_out), cmp_bytes)
    # Live temporaries: possible f32 copy of the input tile, the f32 flat
    # width-matmul result, and one (H_out, W_out) f32 height-matmul tile.
    live = (_tile_bytes((b, h, w), 4)
            + _tile_bytes((b, h, w_out), 4)
            + _tile_bytes((h_out, w_out), 4))
    return 2 * (in_blk + out_blk + consts) + y_scr + live


def _vmem_capacity_bytes() -> int:
    """Per-core VMEM capacity; conservative fallback if the query fails."""
    try:
        return int(pltpu.get_tpu_info().vmem_capacity_bytes)
    except Exception:
        return 64 << 20  # v7x per-TensorCore VMEM (smallest of the three gens)


def _pick_batch(nc, h, w, h_out, w_out, in_bytes, out_bytes, cmp_bytes,
                budget_bytes) -> int:
    """Largest divisor B of nc whose per-step VMEM need fits the budget while
    keeping >= 4 grid steps (2 per v7x TensorCore) for pipelining overlap."""
    min_steps = 4 if nc >= 4 else (2 if nc >= 2 else 1)
    best = 1
    for b in range(1, nc + 1):
        if nc % b:
            continue
        if nc // b < min_steps:
            break
        if _step_vmem_bytes(b, h, w, h_out, w_out,
                            in_bytes, out_bytes, cmp_bytes) > budget_bytes:
            break
        best = b
    return best


# ----------------------------------------------------------------------------
# Kernel
# ----------------------------------------------------------------------------

def _resize_kernel(x_ref, ah_ref, awt_ref, o_ref, y_ref):
    # x_ref:   (B, H, W)       input block
    # ah_ref:  (H_out, H)      scalar factor already folded in on the host
    # awt_ref: (W, W_out)
    # o_ref:   (B, H_out, W_out)
    # y_ref:   (B, H, W_out)   VMEM scratch for the width-resized intermediate
    B, H, W = x_ref.shape
    W_out = awt_ref.shape[1]

    x = x_ref[...]
    if x.dtype != awt_ref.dtype:          # trace-time branch; dead for f32/bf16
        x = x.astype(awt_ref.dtype)

    # Width resize: one large flattened MXU matmul (M = B*H), f32 accumulation.
    y = jnp.dot(x.reshape(B * H, W), awt_ref[...],
                preferred_element_type=jnp.float32)            # (B*H, W_out)
    y_ref[...] = y.reshape(B, H, W_out).astype(y_ref.dtype)

    # Height resize: per-slice 2-D matmul reusing the single A_h tile.  No
    # broadcast-materialized copies of A_h (saves VMEM / vregs vs. batched dot).
    def body(b, carry):
        o_ref[b] = jnp.dot(ah_ref[...], y_ref[b],
                           preferred_element_type=jnp.float32).astype(o_ref.dtype)
        return carry

    lax.fori_loop(0, B, body, 0, unroll=B <= 8)


# ----------------------------------------------------------------------------
# Wrapper
# ----------------------------------------------------------------------------

def resize_transform(x: jax.Array, vel_resize: float) -> jax.Array:
    """Pallas implementation of ResizeTransform.forward for ndims=2 (NCHW input)."""
    # TODO(synk): extend to ndims=1/3 (linear / trilinear) via the same
    # separable-matrix scheme; only the ndims=2 (bilinear) path is implemented.
    factor = 1.0 / vel_resize
    if factor == 1.0:
        return x

    N, C, H, W = x.shape
    # Matches PyTorch: output_size = floor(input_size * (1/vel_resize)) with the
    # same double-precision `factor` PyTorch itself computes in __init__.
    H_out = int(np.floor(H * factor))
    W_out = int(np.floor(W * factor))

    # factor * interp(x) == interp(factor * x) == (factor * A_h) @ x @ A_w^T,
    # so both branches fold the scalar into A_h on the host; the kernel does
    # pure matmuls (no per-element VPU scaling survives in the kernel).
    x_is_bf16 = x.dtype == jnp.bfloat16
    compute_dtype = jnp.bfloat16 if x_is_bf16 else jnp.float32
    A_h = jnp.asarray(_interp_matrix(H_out, H, scale=factor), dtype=compute_dtype)
    A_w_T = jnp.asarray(_interp_matrix(W_out, W).T, dtype=compute_dtype)

    in_bytes = x.dtype.itemsize
    out_bytes = x.dtype.itemsize
    cmp_bytes = jnp.dtype(compute_dtype).itemsize

    NC = N * C
    vmem_cap = _vmem_capacity_bytes()
    budget = int(0.40 * vmem_cap)              # blocks + constants + scratch
    B = _pick_batch(NC, H, W, H_out, W_out, in_bytes, out_bytes, cmp_bytes, budget)
    need = _step_vmem_bytes(B, H, W, H_out, W_out, in_bytes, out_bytes, cmp_bytes)

    # vmem_limit: always covers the padded need with headroom, never above
    # ~75% of the physical per-core capacity (thin on v7x's 64 MiB, generous
    # on v5e/v6e's 128 MiB).
    vmem_limit = int(min(0.75 * vmem_cap, max(32 << 20, 2 * need)))
    vmem_limit = int(max(vmem_limit, need + (4 << 20)))

    x_flat = x.reshape(NC, H, W)

    # NOTE: the output block keeps the natural (B, H_out, W_out) layout.  When
    # W_out is not a multiple of 128 the stores are lane-masked; the lane-dense
    # alternatives (pad W_out to 128 + host slice, or an (H_out, B*W_out) slab
    # + host transpose) both add a full extra HBM pass, which costs more than
    # the masked stores at these sizes.  The constant A_h / A_w_T operands are
    # tiny here, so default double-buffering of them is left as-is (consider
    # pipeline_mode=pl.Buffered(1) for very large H/W).
    out_flat = pl.pallas_call(
        _resize_kernel,
        out_shape=jax.ShapeDtypeStruct((NC, H_out, W_out), x.dtype),
        grid=(NC // B,),
        in_specs=[
            pl.BlockSpec((B, H, W), lambda i: (i, 0, 0)),
            # Constant operands: index_map never changes -> fetched once, reused.
            pl.BlockSpec((H_out, H), lambda i: (0, 0)),
            pl.BlockSpec((W, W_out), lambda i: (0, 0)),
        ],
        out_specs=pl.BlockSpec((B, H_out, W_out), lambda i: (i, 0, 0)),
        scratch_shapes=[pltpu.VMEM((B, H, W_out), compute_dtype)],
        compiler_params=pltpu.CompilerParams(
            dimension_semantics=("parallel",),
            vmem_limit_bytes=vmem_limit,
        ),
    )(x_flat, A_h, A_w_T)

    return out_flat.reshape(N, C, H_out, W_out)


# ----------------------------------------------------------------------------
# Reference + test
# ----------------------------------------------------------------------------

def _reference_numpy(x: np.ndarray, vel_resize: float) -> np.ndarray:
    """Plain numpy reference of the PyTorch forward (bilinear, align_corners=True),
    keeping the original pre-/post-scaling branch order."""
    factor = 1.0 / vel_resize
    if factor == 1.0:
        return x
    N, C, H, W = x.shape
    H_out = int(np.floor(H * factor))
    W_out = int(np.floor(W * factor))

    xf = x.astype(np.float64)
    if factor > 1.0:
        xf = factor * xf

    ys = (np.arange(H_out) * (H - 1) / (H_out - 1)) if H_out > 1 else np.zeros(H_out)
    xs = (np.arange(W_out) * (W - 1) / (W_out - 1)) if W_out > 1 else np.zeros(W_out)
    y0 = np.clip(np.floor(ys).astype(int), 0, H - 1)
    y1 = np.minimum(y0 + 1, H - 1)
    x0 = np.clip(np.floor(xs).astype(int), 0, W - 1)
    x1 = np.minimum(x0 + 1, W - 1)
    wy1 = ys - y0
    wy0 = 1.0 - wy1
    wx1 = xs - x0
    wx0 = 1.0 - wx1

    top = xf[:, :, y0, :][:, :, :, x0] * wx0 + xf[:, :, y0, :][:, :, :, x1] * wx1
    bot = xf[:, :, y1, :][:, :, :, x0] * wx0 + xf[:, :, y1, :][:, :, :, x1] * wx1
    out = top * wy0[None, None, :, None] + bot * wy1[None, None, :, None]

    if factor < 1.0:
        out = factor * out
    return out.astype(x.dtype)


if __name__ == "__main__":
    # ResizeTransform has no learnable parameters; nothing to initialize.
    N, C, H, W = 2, 4, 16, 16
    key = jax.random.PRNGKey(0)
    x = jax.random.normal(key, (N, C, H, W), dtype=jnp.float32)

    # Upsample branch (factor > 1): scale, then interpolate.
    out_up = jax.block_until_ready(resize_transform(x, 0.5))
    ref_up = _reference_numpy(np.asarray(x), 0.5)
    assert out_up.shape == ref_up.shape, (out_up.shape, ref_up.shape)
    np.testing.assert_allclose(np.asarray(out_up), ref_up, atol=1e-4, rtol=1e-4)

    # Downsample branch (factor < 1): interpolate, then scale.
    out_dn = jax.block_until_ready(resize_transform(x, 2.0))
    ref_dn = _reference_numpy(np.asarray(x), 2.0)
    assert out_dn.shape == ref_dn.shape, (out_dn.shape, ref_dn.shape)
    np.testing.assert_allclose(np.asarray(out_dn), ref_dn, atol=1e-4, rtol=1e-4)

    print("KERNEL_OK")
</pallas_src>

<mosaic_0001>
module attributes {stable_mosaic.version = 11 : i64} {
  func.func @_resize_kernel(%arg0: i32, %arg1: memref<2x16x16xf32, #tpu.memory_space<vmem>>, %arg2: memref<32x16xf32, #tpu.memory_space<vmem>>, %arg3: memref<16x32xf32, #tpu.memory_space<vmem>>, %arg4: memref<2x32x32xf32, #tpu.memory_space<vmem>>, %arg5: memref<2x16x32xf32, #tpu.memory_space<vmem>>) attributes {dimension_semantics = [#tpu.dimension_semantics<parallel>], iteration_bounds = array<i64: 4>, scalar_prefetch = 0 : i64, scratch_operands = 1 : i64, tpu.core_type = #tpu.core_type<tc>, window_params = [{transform_indices = @transform_0, window_bounds = array<i64: 2, 16, 16>}, {pipeline_mode = #tpu.pipeline_mode<synchronous>, transform_indices = @transform_1, window_bounds = array<i64: 32, 16>}, {pipeline_mode = #tpu.pipeline_mode<synchronous>, transform_indices = @transform_2, window_bounds = array<i64: 16, 32>}, {transform_indices = @transform_3, window_bounds = array<i64: 2, 32, 32>}]} {
    %c0 = arith.constant 0 : index
    %c0_0 = arith.constant 0 : index
    %c0_1 = arith.constant 0 : index
    %0 = vector.load %arg1[%c0, %c0_0, %c0_1] : memref<2x16x16xf32, #tpu.memory_space<vmem>>, vector<2x16x16xf32>
    %1 = vector.shape_cast %0 : vector<2x16x16xf32> to vector<32x16xf32>
    %c0_2 = arith.constant 0 : index
    %c0_3 = arith.constant 0 : index
    %2 = vector.load %arg3[%c0_2, %c0_3] : memref<16x32xf32, #tpu.memory_space<vmem>>, vector<16x32xf32>
    %cst = arith.constant dense<0.000000e+00> : vector<32x32xf32>
    %3 = tpu.matmul %1, %2, %cst {dimension_numbers = #tpu.dot_dimension_numbers<[1], [0], [0], [1], [0, 0, 1, 1], [], []>} : vector<32x16xf32>, vector<16x32xf32>, vector<32x32xf32> -> vector<32x32xf32>
    %4 = vector.shape_cast %3 : vector<32x32xf32> to vector<2x16x32xf32>
    %c0_4 = arith.constant 0 : index
    %c0_5 = arith.constant 0 : index
    %c0_6 = arith.constant 0 : index
    %5 = vector.load %arg5[%c0_4, %c0_5, %c0_6] : memref<2x16x32xf32, #tpu.memory_space<vmem>>, vector<2x16x32xf32>
    tpu.vector_store %arg5[%c0_4, %c0_5, %c0_6], %4 {strides = array<i32>} : memref<2x16x32xf32, #tpu.memory_space<vmem>>, vector<2x16x32xf32>,
    %c0_i32 = arith.constant 0 : i32
    %c0_7 = arith.constant 0 : index
    %c0_8 = arith.constant 0 : index
    %6 = vector.load %arg2[%c0_7, %c0_8] : memref<32x16xf32, #tpu.memory_space<vmem>>, vector<32x16xf32>
    %7 = arith.index_cast %c0_i32 : i32 to index
    %c0_9 = arith.constant 0 : index
    %c0_10 = arith.constant 0 : index
    %8 = vector.load %arg5[%7, %c0_9, %c0_10] : memref<2x16x32xf32, #tpu.memory_space<vmem>>, vector<1x16x32xf32>
    %9 = vector.shape_cast %8 : vector<1x16x32xf32> to vector<16x32xf32>
    %cst_11 = arith.constant dense<0.000000e+00> : vector<32x32xf32>
    %10 = tpu.matmul %6, %9, %cst_11 {dimension_numbers = #tpu.dot_dimension_numbers<[1], [0], [0], [1], [0, 0, 1, 1], [], []>} : vector<32x16xf32>, vector<16x32xf32>, vector<32x32xf32> -> vector<32x32xf32>
    %11 = arith.index_cast %c0_i32 : i32 to index
    %c0_12 = arith.constant 0 : index
    %c0_13 = arith.constant 0 : index
    %12 = vector.load %arg4[%11, %c0_12, %c0_13] : memref<2x32x32xf32, #tpu.memory_space<vmem>>, vector<1x32x32xf32>
    %13 = vector.shape_cast %12 : vector<1x32x32xf32> to vector<32x32xf32>
    %14 = vector.shape_cast %10 : vector<32x32xf32> to vector<1x32x32xf32>
    tpu.vector_store %arg4[%11, %c0_12, %c0_13], %14 {strides = array<i32>} : memref<2x32x32xf32, #tpu.memory_space<vmem>>, vector<1x32x32xf32>,
    %c1_i32 = arith.constant 1 : i32
    %c0_14 = arith.constant 0 : index
    %c0_15 = arith.constant 0 : index
    %15 = vector.load %arg2[%c0_14, %c0_15] : memref<32x16xf32, #tpu.memory_space<vmem>>, vector<32x16xf32>
    %16 = arith.index_cast %c1_i32 : i32 to index
    %c0_16 = arith.constant 0 : index
    %c0_17 = arith.constant 0 : index
    %17 = vector.load %arg5[%16, %c0_16, %c0_17] : memref<2x16x32xf32, #tpu.memory_space<vmem>>, vector<1x16x32xf32>
    %18 = vector.shape_cast %17 : vector<1x16x32xf32> to vector<16x32xf32>
    %cst_18 = arith.constant dense<0.000000e+00> : vector<32x32xf32>
    %19 = tpu.matmul %15, %18, %cst_18 {dimension_numbers = #tpu.dot_dimension_numbers<[1], [0], [0], [1], [0, 0, 1, 1], [], []>} : vector<32x16xf32>, vector<16x32xf32>, vector<32x32xf32> -> vector<32x32xf32>
    %20 = arith.index_cast %c1_i32 : i32 to index
    %c0_19 = arith.constant 0 : index
    %c0_20 = arith.constant 0 : index
    %21 = vector.load %arg4[%20, %c0_19, %c0_20] : memref<2x32x32xf32, #tpu.memory_space<vmem>>, vector<1x32x32xf32>
    %22 = vector.shape_cast %21 : vector<1x32x32xf32> to vector<32x32xf32>
    %23 = vector.shape_cast %19 : vector<32x32xf32> to vector<1x32x32xf32>
    tpu.vector_store %arg4[%20, %c0_19, %c0_20], %23 {strides = array<i32>} : memref<2x32x32xf32, #tpu.memory_space<vmem>>, vector<1x32x32xf32>,
    %c2_i32 = arith.constant 2 : i32
    return
  }
  func.func @transform_0(%arg0: i32) -> (i32, i32, i32) {
    %c0_i32 = arith.constant 0 : i32
    %c0_i32_0 = arith.constant 0 : i32
    %c0_i32_1 = arith.constant 0 : i32
    return %arg0, %c0_i32, %c0_i32_0 : i32, i32, i32
  }
  func.func @transform_1(%arg0: i32) -> (i32, i32) {
    %c0_i32 = arith.constant 0 : i32
    %c0_i32_0 = arith.constant 0 : i32
    %c0_i32_1 = arith.constant 0 : i32
    return %c0_i32, %c0_i32_0 : i32, i32
  }
  func.func @transform_2(%arg0: i32) -> (i32, i32) {
    %c0_i32 = arith.constant 0 : i32
    %c0_i32_0 = arith.constant 0 : i32
    %c0_i32_1 = arith.constant 0 : i32
    return %c0_i32, %c0_i32_0 : i32, i32
  }
  func.func @transform_3(%arg0: i32) -> (i32, i32, i32) {
    %c0_i32 = arith.constant 0 : i32
    %c0_i32_0 = arith.constant 0 : i32
    %c0_i32_1 = arith.constant 0 : i32
    return %arg0, %c0_i32, %c0_i32_0 : i32, i32, i32
  }
}

</mosaic_0001>

<bundles_post_ra>
// kernel: tpu_custom_call.1
= control target key start
LH: loop header
LB: loop body
LE: loop exit
PB: predicated region body
PF: predicated region fallthrough
CT: control target
= control target key end

     0   :  { %8 = vsyncpa [#allocation4], 0  ;;  %s1058_s0 = inlined_call_operand.hbm [shape: f32[8,16,16], index: 0, kind: input, shape index: {}]   ;;  %s1059_s1 = inlined_call_operand.vmem [shape: f32[32,16], index: 1, kind: input, shape index: {}]   ;;  %s1060_s2 = inlined_call_operand.vmem [shape: f32[16,32], index: 2, kind: input, shape index: {}]   ;;  %s1061_s3 = inlined_call_operand.hbm [shape: f32[8,32,32], index: 3, kind: output, shape index: {}]  }
   0x1   :  { %10 = vsyncpa [#allocation4 + $0x1], 0 }
   0x2   :  { %11 = vsyncpa [#allocation5], 0 }
   0x3   :  { %13 = vsyncpa [#allocation5 + $0x1], 0  ;;  %s863_s12 = smov 0   ;;  %s865_s13 = smov 0  }
   0x4   :  { %s867_s14 = smov 0   ;;  %s869_s15 = smov 0  }
   0x5 LB: > { %s884_s16 = sadd.s32 4294967295, %s835_s15   ;;  %s605_s17 = sadd.s32 4294967294, %s835_s15   ;;  %s835_s15 = sphi %s869_s15, %s1075_s15   ;;  %s831_s14 = sphi %s867_s14, %s1074_s14   ;;  %s827_s13 = sphi %s865_s13, %s1073_s13   ;;  %s823_s12 = sphi %s863_s12, %s1072_s12  }
   0x6   : > { %s888_s18 = sadd.s32 1, %s835_s15   ;;  %s26_s19 = sadd.s32 1, %s831_s14 }
   0x7   : > { %s23_s20 = ssub.s32 %s835_s15, %s888_s18  ;;  %p33_p0 = scmp.ne.s32.totalorder %s831_s14, %s827_s13 }
   0x8   : > { %p24_p1 = scmp.eq.s32.totalorder %s23_s20, 0  ;;  %p34_p2 = scmp.eq.s32.totalorder %s835_s15, 0 }
   0x9   : > { %p39_p3 = scmp.ne.s32.totalorder %s827_s13, %s823_s12  ;;  %p40_p4 = scmp.eq.s32.totalorder %s884_s16, 0 }
   0xa   : > { %s900_s21 = scalar_select %p24_p1, %s831_s14, %s26_s19  }
   0xb   : > { %p902_p5 = por %p34_p2, %p33_p0  ;;  %p906_p6 = por %p40_p4, %p39_p3 }
   0xc   : > { %p105_p7 = scmp.eq.s32.totalorder %s884_s16, 3  ;;  %p111_p8 = scmp.eq.s32.totalorder %s605_s17, 3 }
   0xd   : > { %s1065_s23 = scalar_select %p906_p6, 1, 0 }
   0xe   : > { %p705_p9 = scmp.lt.s32.totalorder %s835_s15, 4  ;;  %p912_p10 = por %p105_p7, %p33_p0 }
   0xf   : > { %p916_p11 = por %p111_p8, %p39_p3  ;;  %s137_s26 = sand.u32 1, %s831_s14  }
  0x10   : > { %s1066_s24 = scalar_select %p912_p10, 1, 0 }
  0x11   : > { %s1067_s25 = scalar_select %p916_p11, 1, 0 }
  0x12   : > { %s638_s27 = sshll.u32 %s835_s15, 9  ;;  %s608_s28 = sshll.u32 %s137_s26, 5 }
  0x13   : > { %s925_s4 = scalar_lea.hbm %s1058_s0, %s638_s27  ;;  %s141_s5 = scalar_lea.vmem [#allocation3], %s608_s28 }
  0x14   : > { %s149_s6 = sshll.u32 %s141_s5, 4  ;;  %p929_p12 = pnand %p705_p9, %p902_p5  ;;  %s933_s6 = int_to_ptr.vmem [resolvable:$true] %s149_s6 }
  0x15   : > { %s935_s8 = scalar_lea.sflag [#allocation4], %s137_s26  ;;  %s743_s9 = scalar_lea.hbm %s925_s4, 512 }
  0x16   : > { %p744_p13 = scmp.ne.s32.totalorder %s925_s4, %s743_s9  ;;  %p745_p0 = pneg %p929_p12 }
  0x17   : > { %s748_s17 = scalar_lea.hbm %s1058_s0, 2048  ;;  %p749_p3 = scmp.lt.s32.totalorder %s925_s4, %s1058_s0 }
  0x18   : > { %p746_p1 = pnand %p745_p0, %p744_p13  ;;  %p750_p4 = scmp.lt.s32.totalorder %s748_s17, %s743_s9 }
  0x1a   : > { %p747_p2 = pneg %p746_p1  ;;  %p751_p5 = por %p750_p4, %p749_p3 }
  0x1c   : > { %p752_p7 = pnand %p751_p5, %p747_p2 }
  0x1e   : > { %755 = shalt.err (!%p752_p7)
}
  0x1f   : > { %s756_s22 = scalar_lea.vmem %s933_s6, 512  ;;  %s837_s26 = smov [#allocation3]  }
  0x20   : > { %p757_p8 = scmp.ne.s32.totalorder %s933_s6, %s756_s22  ;;  %s761_s27 = sshll.u32 %s837_s26, 4  ;;  %s762_s27 = int_to_ptr.vmem [resolvable:$false] %s761_s27 }
  0x21   : > { %s763_s28 = scalar_lea.vmem %s762_s27, 1024  ;;  %p764_p1 = scmp.lt.s32.totalorder %s933_s6, %s762_s27 }
  0x22   : > { %p759_p9 = pnand %p757_p8, %p745_p0  ;;  %p765_p11 = scmp.lt.s32.totalorder %s763_s28, %s756_s22 }
  0x24   : > { %p760_p13 = pneg %p759_p9  ;;  %p766_p10 = por %p765_p11, %p764_p1 }
  0x26   : > { %p767_p6 = pnand %p766_p10, %p760_p13 }
  0x28   : > { %770 = shalt.err (!%p767_p6)
}
  0x29   : > { %s838_s29 = smov 128   ;;  %s839_s30 = smov 8  }
  0x2a   : > { %700 = dma.hbm_to_vmem [thread:$0]  (!%p929_p12), %s925_s4, 512, %s933_s6, %s935_s8, %s838_s29, %s838_s29, %s839_s30  }
  0x2b   : > { %p612_p0 = scmp.ge.s32.totalorder %s835_s15, 1  ;;  %p157_p2 = scmp.lt.s32.totalorder %s835_s15, 5 }
  0x2d   : > { %p158_p3 = pnand %p612_p0, %p157_p2 }
  0x2e   : > { %s959_s5 = sand.u32 (!%p158_p3), 1, %s827_s13   ;;  %p1069_p6 = scmp.ne.s32.totalorder (!%p158_p3), %s1065_s23, 0 }
  0x2f   : > { %161 = sbr.rel (%p158_p3) target bundleno = 477 (0x1dd), region = 32  ;;  %s613_s9 = sshll.u32 (!%p158_p3), %s959_s5, 5 }
  0x30   : > { %s164_s10 = scalar_lea.sflag (!%p158_p3), [#allocation4], %s959_s5  ;;  %s167_s11 = scalar_lea.vmem (!%p158_p3), [#allocation3], %s613_s9 }
  0x34   : > { %814 = dma.done.wait (%p1069_p6), %s164_s10, 512  }
  0x35   : > { %816 = vsyncadd (%p1069_p6), %s164_s10, 4294966784  ;;  %v197_v0 = vld [vmem:[%s1060_s2 + $0x8] sm:$0xff]  ;;  %v196_v1 = vld [vmem:[%s1060_s2] sm:$0xff]  ;;  %vm198_vm0 = vcmask 130048   ;;  %vm296_vm1 = vcmask 261120   ;;  %s614_s29 = sshll.u32 %s959_s5, 6 }
  0x36   : > { %659 = vmatprep.subr.mxu0 %v197_v0  ;;  %689 = vmatprep.subr.mxu1 %v197_v0  ;;  %v192_v2 = vld [vmem:[%s167_s11] sm:$0xff]  ;;  %v194_v3 = vld [vmem:[%s167_s11 + $0x10] sm:$0xff]  ;;  %v193_v4 = vld [vmem:[%s167_s11 + $0x8] sm:$0xff]  ;;  %s189_s30 = scalar_lea.vmem [#allocation6], %s614_s29  ;;  %s640_s10 = sshll.u32 %s884_s16, 10 }
  0x37   : > { %660 = vmatpush3.msra.mxu0 %v197_v0  ;;  %691 = vmatpush3.msra.mxu1 %v197_v0  ;;  %v195_v5 = vld [vmem:[%s167_s11 + $0x18] sm:$0xff]  ;;  %v301_v6 = vld [vmem:[%s1059_s1] sm:$0xff]  ;;  %v302_v15 = vld [vmem:[%s1059_s1 + $0x8] sm:$0xff]  ;;  %s532_s9 = sshll.u32 %s189_s30, 4  ;;  %s1012_s4 = scalar_lea.hbm %s1061_s3, %s640_s10  ;;  %s1005_s9 = int_to_ptr.vmem [resolvable:$true] %s532_s9 }
  0x38   : > { %661 = vmatprep.subr.mxu0 %v196_v1  ;;  %690 = vmatprep.subr.mxu1 %v196_v1  ;;  %v303_v16 = vld [vmem:[%s1059_s1 + $0x10] sm:$0xff]  ;;  %v304_v17 = vld [vmem:[%s1059_s1 + $0x18] sm:$0xff]  ;;  %s518_s16 = scalar_lea.sflag [#allocation5], %s959_s5  ;;  %s771_s6 = scalar_lea.vmem %s1005_s9, 1024 }
  0x39   : > { %662 = vmatpush3.msra.mxu0 %v196_v1  ;;  %692 = vmatpush3.msra.mxu1 %v196_v1  ;;  %p772_p10 = scmp.ne.s32.totalorder %s1005_s9, %s771_s6  ;;  %p1070_p11 = scmp.ne.s32.totalorder %s1066_s24, 0 }
  0x3a   : > { %663 = vmatprep.mubr.msk.f32.mxu0 %vm198_vm0, %v192_v2  ;;  %666 = vmatprep.mubr.msk.f32.mxu1 %vm198_vm0, %v194_v3  ;;  %s840_s8 = smov [#allocation6]  }
  0x3b   : > { %664 = vmatmul.mubr.msk.f32.vlgmr.msra.gmra.mxu0 %vm198_vm0, %v193_v4  ;;  %667 = vmatmul.mubr.msk.f32.vlgmr.msra.gmra.mxu1 %vm198_vm0, %v195_v5  ;;  %p773_p12 = pnand %p772_p10, %p1070_p11  ;;  %s775_s23 = sshll.u32 %s840_s8, 4  ;;  %s776_s23 = int_to_ptr.vmem [resolvable:$false] %s775_s23 }
  0x3c   : > { %673 = vmatprep.mubr.msk.f32.mxu1 %vm198_vm0, %v301_v6  ;;  %683 = vmatprep.mubr.msk.f32.mxu0 %vm198_vm0, %v301_v6  ;;  %s777_s17 = scalar_lea.vmem %s776_s23, 2048  ;;  %p778_p5 = scmp.lt.s32.totalorder %s1005_s9, %s776_s23 }
  0x3d   : > { %p774_p4 = pneg %p773_p12  ;;  %p779_p7 = scmp.lt.s32.totalorder %s777_s17, %s771_s6 }
  0x3f   : > { %p780_p8 = por %p779_p7, %p778_p5 }
  0x41   : > { %p781_p9 = pnand %p780_p8, %p774_p4 }
  0xfb   : > { %v665_v7 = vpop.f32.mrf.mxu0  ;;  %v668_v8 = vpop.f32.mrf.mxu1 }
  0xfc   : > { %298 = vst.msk [vmem:[#allocation2 + $0x8] sm:$0xff] %vm296_vm1, %v665_v7  ;;  %300 = vst.msk [vmem:[#allocation2 + $0x18] sm:$0xff] %vm296_vm1, %v668_v8 }
  0xfd   : > { %v277_v9 = vpop.f32.mrf.mxu0  ;;  %v287_v10 = vpop.f32.mrf.mxu1 }
  0xfe   : > { %297 = vst.msk [vmem:[#allocation2] sm:$0xff] %vm296_vm1, %v277_v9  ;;  %299 = vst.msk [vmem:[#allocation2 + $0x10] sm:$0xff] %vm296_vm1, %v287_v10 }
 0x103   : > { %v306_v11 = vld [vmem:[#allocation2 + $0x8] sm:$0xff]  ;;  %v414_v12 = vld [vmem:[#allocation2 + $0x18] sm:$0xff] }
 0x104   : > { %669 = vmatprep.subr.mxu1 %v306_v11  ;;  %679 = vmatprep.subr.mxu0 %v414_v12 }
 0x105   : > { %670 = vmatpush3.msra.mxu1 %v306_v11  ;;  %680 = vmatpush3.msra.mxu0 %v414_v12  ;;  %v305_v13 = vld [vmem:[#allocation2] sm:$0xff]  ;;  %v413_v14 = vld [vmem:[#allocation2 + $0x10] sm:$0xff] }
 0x106   : > { %671 = vmatprep.subr.mxu1 %v305_v13  ;;  %681 = vmatprep.subr.mxu0 %v413_v14 }
 0x107   : > { %672 = vmatpush3.msra.mxu1 %v305_v13  ;;  %682 = vmatpush3.msra.mxu0 %v413_v14 }
 0x108   : > { %674 = vmatmul.mubr.msk.f32.vlgmr.msra.gmra.mxu1 %vm198_vm0, %v302_v15  ;;  %684 = vmatmul.mubr.msk.f32.vlgmr.msra.gmra.mxu0 %vm198_vm0, %v302_v15 }
 0x109   : > { %676 = vmatprep.mubr.msk.f32.mxu1 %vm198_vm0, %v303_v16  ;;  %686 = vmatprep.mubr.msk.f32.mxu0 %vm198_vm0, %v303_v16 }
 0x10c   : > { %677 = vmatmul.mubr.msk.f32.gmra.mxu1 %vm198_vm0, %v304_v17  ;;  %687 = vmatmul.mubr.msk.f32.gmra.mxu0 %vm198_vm0, %v304_v17 }
 0x1c8   : > { %v675_v18 = vpop.f32.mrf.mxu1  ;;  %v685_v19 = vpop.f32.mrf.mxu0 }
 0x1c9   : > { %405 = vst.msk [vmem:[%s189_s30 + $0x8] sm:$0xff] %vm296_vm1, %v675_v18  ;;  %628 = vst.msk [vmem:[%s189_s30 + $0x28] sm:$0xff] %vm296_vm1, %v685_v19 }
 0x1ca   : > { %v385_v20 = vpop.f32.mrf.mxu1  ;;  %v493_v21 = vpop.f32.mrf.mxu0 }
 0x1cb   : > { %404 = vst.msk [vmem:[%s189_s30] sm:$0xff] %vm296_vm1, %v385_v20  ;;  %627 = vst.msk [vmem:[%s189_s30 + $0x20] sm:$0xff] %vm296_vm1, %v493_v21 }
 0x1cc   : > { %v678_v22 = vpop.f32.mrf.mxu1  ;;  %v688_v23 = vpop.f32.mrf.mxu0 }
 0x1cd   : > { %407 = vst.msk [vmem:[%s189_s30 + $0x18] sm:$0xff] %vm296_vm1, %v678_v22  ;;  %630 = vst.msk [vmem:[%s189_s30 + $0x38] sm:$0xff] %vm296_vm1, %v688_v23 }
 0x1ce   : > { %v395_v24 = vpop.f32.mrf.mxu1  ;;  %v503_v25 = vpop.f32.mrf.mxu0 }
 0x1cf   : > { %406 = vst.msk [vmem:[%s189_s30 + $0x10] sm:$0xff] %vm296_vm1, %v395_v24  ;;  %629 = vst.msk [vmem:[%s189_s30 + $0x30] sm:$0xff] %vm296_vm1, %v503_v25 }
 0x1d0   : > { %784 = shalt.err (!%p781_p9)
}
 0x1d1   : > { %s785_s19 = scalar_lea.hbm %s1012_s4, 1024  ;;  %s789_s26 = scalar_lea.hbm %s1061_s3, 4096 }
 0x1d2   : > { %p786_p13 = scmp.ne.s32.totalorder %s1012_s4, %s785_s19  ;;  %p790_p2 = scmp.lt.s32.totalorder %s1012_s4, %s1061_s3 }
 0x1d3   : > { %p791_p3 = scmp.lt.s32.totalorder %s789_s26, %s785_s19 }
 0x1d4   : > { %p787_p1 = pnand %p786_p13, %p1070_p11 }
 0x1d5   : > { %p792_p6 = por %p791_p3, %p790_p2 }
 0x1d6   : > { %p788_p0 = pneg %p787_p1 }
 0x1d8   : > { %p793_p10 = pnand %p792_p6, %p788_p0 }
 0x1da   : > { %796 = shalt.err (!%p793_p10)
}
 0x1db   : > { %s841_s29 = smov 128   ;;  %s842_s30 = smov 8  }
 0x1dc   : > { %695 = dma.vmem_to_hbm [thread:$0]  (%p1070_p11), %s1005_s9, 1024, %s1012_s4, %s518_s16, %s841_s29, %s841_s29, %s842_s30  }
 0x1dd PF: > { %p706_p12 = scmp.ge.s32.totalorder %s835_s15, 2  ;;  %s547_s10 = sand.u32 1, %s823_s12  }
 0x1de   : > { %p1071_p4 = scmp.ne.s32.totalorder %s1067_s25, 0  ;;  %s548_s11 = scalar_lea.sflag [#allocation5], %s547_s10 }
 0x1e0   : > { %p702_p5 = pnand %p706_p12, %p1071_p4 }
 0x1e2   : > { %p703_p7 = pneg %p702_p5 }
 0x1e4   : > { %818 = dma.done.wait (%p703_p7), %s548_s11, 1024  }
 0x1e5   : > { %820 = vsyncadd (%p703_p7), %s548_s11, 4294966272  ;;  %p16_p8 = scmp.ge.s32.totalorder %s888_s18, 6   ;;  %s1072_s12 = smov %s827_s13 }
 0x1e6   : > { %s1073_s13 = smov %s831_s14  ;;  %s1074_s14 = smov %s900_s21 }
 0x1e7   : > { %s1075_s15 = smov %s888_s18  ;;  %18 = sbr.rel (!%p16_p8) target bundleno = 5 (0x5), region = 79 }
 0x1ec   :  { %553 = vsyncpa [#allocation4], 1 }
 0x1ed   :  { %555 = vsyncpa [#allocation4 + $0x1], 1 }
 0x1ee   :  { %556 = vsyncpa [#allocation5], 1 }
 0x1ef   :  { %558 = vsyncpa [#allocation5 + $0x1], 1 }

</bundles_post_ra>
